<compile_context>
chip_gen: v5e
topology: v5e:2x2
jax: 0.10.0
libtpu: 0.0.40
codegen_flags: <defaults>
</compile_context>

<pallas_src>
import functools

import jax
import jax.numpy as jnp
from jax.experimental import pallas as pl
from jax.experimental.pallas import tpu as pltpu


NUM_CLASSES = 8


def _round_up(x: int, m: int) -> int:
    return ((x + m - 1) // m) * m


# ----------------------------------------------------------------------------
# Pallas kernel: tiled linear layer (bf16 matmul on MXU, f32 accumulate, +bias).
# ----------------------------------------------------------------------------
def _linear_kernel(x_ref, w_ref, b_ref, o_ref, acc_ref):
    # x_ref: [tm, tk] bf16   w_ref: [tk, tn] bf16
    # b_ref: [1, tn]  f32    o_ref: [tm, tn] f32   acc_ref: [tm, tn] f32 (VMEM)
    k = pl.program_id(2)

    @pl.when(k == 0)
    def _():
        acc_ref[...] = jnp.zeros_like(acc_ref)

    acc_ref[...] += jnp.dot(
        x_ref[...], w_ref[...], preferred_element_type=jnp.float32
    )

    @pl.when(k == pl.num_programs(2) - 1)
    def _():
        # Bias add + store in f32 (lane-dense, unmasked stores thanks to padding).
        o_ref[...] = (acc_ref[...] + b_ref[...]).astype(o_ref.dtype)


@functools.partial(jax.jit, static_argnames=("num_classes",))
def pallas_linear(x_flat, w, b, *, num_classes):
    """logits[:, :num_classes] of (x_flat @ w + b), computed with a tiled Pallas kernel.

    x_flat: [B, D] (any float dtype)    w: [D, N] (bf16 or f32)    b: [N] f32
    Dimensions are zero-padded to MXU/vreg-friendly tiles:
      M -> multiple of 16 (128-tiles once B >= 128),
      N -> multiple of 128 (256 only if the real class count exceeds 128),
      K -> multiple of tk (512, or 128-rounded D when D < 512).
    """
    B, D = x_flat.shape
    Dw, N = w.shape
    assert D == Dw and N >= num_classes

    # ---- tile sizes -------------------------------------------------------
    tm = 128 if B >= 128 else _round_up(max(B, 1), 16)   # sublane-aligned (bf16 needs 16)
    tn = 256 if N > 128 else 128                          # lane-dense output tile
    tk = 512 if D >= 512 else _round_up(D, 128)

    M_pad = _round_up(B, tm)
    N_pad = _round_up(N, tn)
    K_pad = _round_up(D, tk)

    # ---- pad + cast operands (bf16 for the MXU, f32 bias/accumulator) -----
    x_p = jnp.zeros((M_pad, K_pad), jnp.bfloat16).at[:B, :D].set(
        x_flat.astype(jnp.bfloat16))
    w_p = jnp.zeros((K_pad, N_pad), jnp.bfloat16).at[:D, :N].set(
        w.astype(jnp.bfloat16))
    b_p = jnp.zeros((1, N_pad), jnp.float32).at[0, :N].set(
        b.astype(jnp.float32))

    grid = (M_pad // tm, N_pad // tn, K_pad // tk)

    out_pad = pl.pallas_call(
        _linear_kernel,
        out_shape=jax.ShapeDtypeStruct((M_pad, N_pad), jnp.float32),
        grid=grid,
        in_specs=[
            pl.BlockSpec((tm, tk), lambda i, j, k: (i, k)),
            pl.BlockSpec((tk, tn), lambda i, j, k: (k, j)),
            pl.BlockSpec((1, tn), lambda i, j, k: (0, j)),
        ],
        out_specs=pl.BlockSpec((tm, tn), lambda i, j, k: (i, j)),
        scratch_shapes=[pltpu.VMEM((tm, tn), jnp.float32)],
        compiler_params=pltpu.CompilerParams(
            # M / N independent (megacore / v7x dual-TC), K is the reduction.
            dimension_semantics=("parallel", "parallel", "arbitrary"),
            vmem_limit_bytes=32 * 1024 * 1024,
        ),
    )(x_p, w_p, b_p)

    return out_pad[:B, :num_classes]


# ----------------------------------------------------------------------------
# Evaluator — faithful port of the abstract base class.
# ----------------------------------------------------------------------------
class Evaluator:
    """Explanation methods that create feature attributions should follow
    this signature."""

    def __init__(self, model, postprocess=None):
        self.model = model
        self.postprocess = postprocess

    def forward(self, X, Z):
        """Given a minibatch of examples X and feature attributions Z,
        evaluate the quality of the feature attribution."""
        # TODO(synk): abstract in the reference (raises NotImplementedError);
        # there is no concrete evaluation metric to translate to Pallas.
        raise NotImplementedError()

    __call__ = forward


# ----------------------------------------------------------------------------
# Synthetic wrapped model: Pallas-backed linear classifier over NCHW inputs.
# ----------------------------------------------------------------------------
def make_model(C, H, W, num_classes=NUM_CLASSES):
    D = C * H * W
    kw, kb = jax.random.split(jax.random.PRNGKey(42))
    # Weights stored in bf16 (native MXU dtype on v6e/v7x; halves DMA bytes).
    w = (jax.random.normal(kw, (D, num_classes), dtype=jnp.float32)
         / jnp.sqrt(jnp.float32(D))).astype(jnp.bfloat16)
    b = 0.01 * jax.random.normal(kb, (num_classes,), dtype=jnp.float32)

    def model(x_nchw):
        B = x_nchw.shape[0]
        x_flat = x_nchw.reshape(B, -1)  # row-major flatten, same as torch .view
        return pallas_linear(x_flat, w, b, num_classes=num_classes)

    return model, w, b


if __name__ == "__main__":
    B, C, H, W = 2, 4, 16, 16
    key = jax.random.PRNGKey(0)
    kx, kz = jax.random.split(key)
    X = jax.random.normal(kx, (B, C, H, W), dtype=jnp.float32)   # examples (NCHW)
    Z = jax.random.uniform(kz, (B, C, H, W), dtype=jnp.float32)  # feature attributions

    model, w, b = make_model(C, H, W)
    evaluator = Evaluator(model, postprocess=None)

    # The abstract forward must raise, exactly like the reference module.
    raised = False
    try:
        evaluator(X, Z)
    except NotImplementedError:
        raised = True
    assert raised, "Evaluator.forward should raise NotImplementedError"

    # Exercise the Pallas hot path of the wrapped model and check against pure JAX
    # (same bf16-in / f32-accumulate recipe).
    logits = evaluator.model(X)
    logits = jax.block_until_ready(logits)

    x_flat = X.reshape(B, -1).astype(jnp.bfloat16)
    ref = jnp.dot(x_flat, w, preferred_element_type=jnp.float32) + b
    assert logits.shape == (B, NUM_CLASSES)
    assert jnp.allclose(logits, ref, atol=1e-2, rtol=1e-2), (
        jnp.max(jnp.abs(logits - ref)))

    print("KERNEL_OK")
</pallas_src>

<mosaic_0001>
module attributes {stable_mosaic.version = 11 : i64} {
  func.func @_linear_kernel(%arg0: i32, %arg1: i32, %arg2: i32, %arg3: memref<16x512xbf16, #tpu.memory_space<vmem>>, %arg4: memref<512x128xbf16, #tpu.memory_space<vmem>>, %arg5: memref<1x128xf32, #tpu.memory_space<vmem>>, %arg6: memref<16x128xf32, #tpu.memory_space<vmem>>, %arg7: memref<16x128xf32, #tpu.memory_space<vmem>>) attributes {dimension_semantics = [#tpu.dimension_semantics<parallel>, #tpu.dimension_semantics<parallel>, #tpu.dimension_semantics<arbitrary>], iteration_bounds = array<i64: 1, 1, 2>, scalar_prefetch = 0 : i64, scratch_operands = 1 : i64, tpu.core_type = #tpu.core_type<tc>, window_params = [{transform_indices = @transform_0, window_bounds = array<i64: 16, 512>}, {transform_indices = @transform_1, window_bounds = array<i64: 512, 128>}, {transform_indices = @transform_2, window_bounds = array<i64: 1, 128>}, {transform_indices = @transform_3, window_bounds = array<i64: 16, 128>}]} {
    %c0_i32 = arith.constant 0 : i32
    %0 = arith.cmpi eq, %arg2, %c0_i32 : i32
    %1 = arith.extui %0 : i1 to i32
    %c0_i32_0 = arith.constant 0 : i32
    %2 = arith.cmpi ne, %1, %c0_i32_0 : i32
    scf.if %2 {
      %cst_9 = arith.constant 0.000000e+00 : f32
      %12 = vector.broadcast %cst_9 : f32 to vector<16x128xf32>
      %c0_10 = arith.constant 0 : index
      %c0_11 = arith.constant 0 : index
      %13 = vector.load %arg7[%c0_10, %c0_11] : memref<16x128xf32, #tpu.memory_space<vmem>>, vector<16x128xf32>
      tpu.vector_store %arg7[%c0_10, %c0_11], %12 {strides = array<i32>} : memref<16x128xf32, #tpu.memory_space<vmem>>, vector<16x128xf32>,
    } else {
    }
    %c0 = arith.constant 0 : index
    %c0_1 = arith.constant 0 : index
    %3 = vector.load %arg7[%c0, %c0_1] : memref<16x128xf32, #tpu.memory_space<vmem>>, vector<16x128xf32>
    %c0_2 = arith.constant 0 : index
    %c0_3 = arith.constant 0 : index
    %4 = vector.load %arg3[%c0_2, %c0_3] : memref<16x512xbf16, #tpu.memory_space<vmem>>, vector<16x512xbf16>
    %c0_4 = arith.constant 0 : index
    %c0_5 = arith.constant 0 : index
    %5 = vector.load %arg4[%c0_4, %c0_5] : memref<512x128xbf16, #tpu.memory_space<vmem>>, vector<512x128xbf16>
    %cst = arith.constant dense<0.000000e+00> : vector<16x128xf32>
    %6 = tpu.matmul %4, %5, %cst {dimension_numbers = #tpu.dot_dimension_numbers<[1], [0], [0], [1], [0, 0, 1, 1], [], []>} : vector<16x512xbf16>, vector<512x128xbf16>, vector<16x128xf32> -> vector<16x128xf32>
    %7 = arith.addf %3, %6 : vector<16x128xf32>
    %c0_6 = arith.constant 0 : index
    %c0_7 = arith.constant 0 : index
    %8 = vector.load %arg7[%c0_6, %c0_7] : memref<16x128xf32, #tpu.memory_space<vmem>>, vector<16x128xf32>
    tpu.vector_store %arg7[%c0_6, %c0_7], %7 {strides = array<i32>} : memref<16x128xf32, #tpu.memory_space<vmem>>, vector<16x128xf32>,
    %c1_i32 = arith.constant 1 : i32
    %9 = arith.cmpi eq, %arg2, %c1_i32 : i32
    %10 = arith.extui %9 : i1 to i32
    %c0_i32_8 = arith.constant 0 : i32
    %11 = arith.cmpi ne, %10, %c0_i32_8 : i32
    scf.if %11 {
      %c0_9 = arith.constant 0 : index
      %c0_10 = arith.constant 0 : index
      %12 = vector.load %arg7[%c0_9, %c0_10] : memref<16x128xf32, #tpu.memory_space<vmem>>, vector<16x128xf32>
      %c0_11 = arith.constant 0 : index
      %c0_12 = arith.constant 0 : index
      %13 = vector.load %arg5[%c0_11, %c0_12] : memref<1x128xf32, #tpu.memory_space<vmem>>, vector<1x128xf32>
      %14 = vector.broadcast %13 : vector<1x128xf32> to vector<16x128xf32>
      %15 = arith.addf %12, %14 : vector<16x128xf32>
      %c0_13 = arith.constant 0 : index
      %c0_14 = arith.constant 0 : index
      %16 = vector.load %arg6[%c0_13, %c0_14] : memref<16x128xf32, #tpu.memory_space<vmem>>, vector<16x128xf32>
      tpu.vector_store %arg6[%c0_13, %c0_14], %15 {strides = array<i32>} : memref<16x128xf32, #tpu.memory_space<vmem>>, vector<16x128xf32>,
    } else {
    }
    return
  }
  func.func @transform_0(%arg0: i32, %arg1: i32, %arg2: i32) -> (i32, i32) {
    %c0_i32 = arith.constant 0 : i32
    return %arg0, %arg2 : i32, i32
  }
  func.func @transform_1(%arg0: i32, %arg1: i32, %arg2: i32) -> (i32, i32) {
    %c0_i32 = arith.constant 0 : i32
    return %arg2, %arg1 : i32, i32
  }
  func.func @transform_2(%arg0: i32, %arg1: i32, %arg2: i32) -> (i32, i32) {
    %c0_i32 = arith.constant 0 : i32
    %c0_i32_0 = arith.constant 0 : i32
    return %c0_i32, %arg1 : i32, i32
  }
  func.func @transform_3(%arg0: i32, %arg1: i32, %arg2: i32) -> (i32, i32) {
    %c0_i32 = arith.constant 0 : i32
    return %arg0, %arg1 : i32, i32
  }
}

</mosaic_0001>

<bundles_post_ra>
// kernel: pallas_linear.1
= control target key start
LH: loop header
LB: loop body
LE: loop exit
PB: predicated region body
PF: predicated region fallthrough
CT: control target
= control target key end

     0   :  { %s1053_s12 = smov 0   ;;  %s1055_s13 = smov 0   ;;  %s1173_s0 = inlined_call_operand.vmem [shape: bf16[16,1024], index: 0, kind: input, shape index: {}]   ;;  %s1174_s1 = inlined_call_operand.vmem [shape: bf16[1024,128], index: 1, kind: input, shape index: {}]   ;;  %s1175_s2 = inlined_call_operand.vmem [shape: f32[1,128], index: 2, kind: input, shape index: {}]   ;;  %s1176_s3 = inlined_call_operand.vmem [shape: f32[16,128], index: 3, kind: output, shape index: {}]  }
   0x1   :  { %s1057_s14 = smov 0   ;;  %s1059_s15 = smov 0  }
   0x2   :  { %s1061_s16 = smov 0  }
   0x3 LB: > { %s25_s17 = sadd.s32 1, %s1026_s15  ;;  %p48_p1 = scmp.ne.s32.totalorder %s1018_s13, %s1014_s12  ;;  %s1030_s16 = sphi %s1061_s16, %s13_s16   ;;  %s1026_s15 = sphi %s1059_s15, %s1180_s15   ;;  %s1022_s14 = sphi %s1057_s14, %s1179_s14   ;;  %s1018_s13 = sphi %s1055_s13, %s1178_s13   ;;  %s1014_s12 = sphi %s1053_s12, %s1177_s12  }
   0x4   : > { %p26_p0 = scmp.ge.s32.totalorder %s25_s17, 2  ;;  %p49_p2 = scmp.eq.s32.totalorder %s1030_s16, 0 }
   0x5   : > { %s41_s19 = sadd.s32 1, %s1018_s13  ;;  %p755_p5 = scmp.ge.s32.totalorder %s1030_s16, 2 }
   0x6   : > { %s1182_s17 = smov (%p26_p0, %s25_s17), 0  ;;  %p50_p3 = por %p49_p2, %p48_p1 }
   0x7   : > { %s37_s18 = ssub.s32 %s1026_s15, %s1182_s17  ;;  %162 = sbr.rel (%p755_p5) target bundleno = 20 (0x14), region = 20 }
   0x8   : > { %p39_p4 = scmp.eq.s32.totalorder %s37_s18, 0 }
   0xa   : > { %s1088_s20 = scalar_select %p39_p4, %s1018_s13, %s41_s19  }
   0xc   : > { %165 = sbr.rel (!%p50_p3) target bundleno = 20 (0x14), region = 24  ;;  %s167_s21 = sand.u32 (%p50_p3), 1, %s1018_s13  }
   0xd   : > { %s913_s22 = sshll.u32 (%p50_p3), %s1026_s15, 4  ;;  %s756_s23 = sshll.u32 (%p50_p3), %s167_s21, 5 }
   0xe   : > { %s175_s26 = scalar_lea.vmem (%p50_p3), %s1173_s0, %s913_s22  ;;  %s169_s27 = scalar_lea.vmem (%p50_p3), [#allocation3], %s756_s23 }
   0xf   : > { %v188_v0 = vld [vmem:[%s175_s26] sm:$0xff] (%p50_p3)  ;;  %v190_v1 = vld [vmem:[%s175_s26 + $0x8] sm:$0xff] (%p50_p3) }
  0x10   : > { %v192_v2 = vld [vmem:[%s175_s26 + $0x20] sm:$0xff] (%p50_p3)  ;;  %189 = vst [vmem:[%s169_s27] sm:$0xff] (%p50_p3), %v188_v0  ;;  %v194_v3 = vld [vmem:[%s175_s26 + $0x28] sm:$0xff] (%p50_p3) }
  0x11   : > { %191 = vst [vmem:[%s169_s27 + $0x8] sm:$0xff] %v190_v1 }
  0x12   : > { %193 = vst [vmem:[%s169_s27 + $0x10] sm:$0xff] %v192_v2 }
  0x13   : > { %195 = vst [vmem:[%s169_s27 + $0x18] sm:$0xff] %v194_v3 }
  0x14 PF: > { %p759_p6 = scmp.ge.s32.totalorder %s1030_s16, 1  ;;  %p212_p7 = scmp.lt.s32.totalorder %s1030_s16, 3 }
  0x16   : > { %p213_p8 = pnand %p759_p6, %p212_p7 }
  0x17   : > { %s219_s28 = sand.u32 (!%p213_p8), 1, %s1014_s12   ;;  %s761_s29 = sshll.u32 (!%p213_p8), %s1022_s14, 6 }
  0x18   : > { %216 = sbr.rel (%p213_p8) target bundleno = 228 (0xe4), region = 51  ;;  %s760_s30 = sshll.u32 (!%p213_p8), %s219_s28, 5 }
  0x19   : > { %p259_p9 = scmp.lt.s32.totalorder (!%p213_p8), %s761_s29, 127  ;;  %s1105_s8 = scalar_lea.vmem (!%p213_p8), [#allocation3], %s760_s30 }
  0x1a   : > { %p763_p10 = scmp.ne.s32.totalorder (!%p213_p8), %s1022_s14, 0 }
  0x1d   : > { %s1184_s29 = smov (!%p259_p9, %s761_s29), 127  ;;  %282 = sbr.rel (%p763_p10) target bundleno = 37 (0x25), region = 59 }
  0x1e   : > { %s762_s4 = sshll.u32 %s1184_s29, 2 }
  0x1f   : > { %s1103_s7 = scalar_lea.vmem %s1174_s1, %s762_s4 }
  0x22   : > { %v1032_v4 = vmov 0.0  }
  0x23   : > { %283 = vst [vmem:[#allocation2] sm:$0xff] %v1032_v4 }
  0x24   : > { %284 = vst [vmem:[#allocation2 + $0x8] sm:$0xff] %v1032_v4 }
  0x25 PF: > { %v925_v5 = vld [vmem:[%s1103_s7 + $0x38] sm:$0xff]  ;;  %v924_v9 = vld [vmem:[%s1103_s7 + $0x30] sm:$0xff]  ;;  %v923_v13 = vld [vmem:[%s1103_s7 + $0x28] sm:$0xff]  ;;  %p908_p11 = scmp.ne.s32.totalorder %s1022_s14, 1 }
  0x26   : > { %v933_v6 = vld [vmem:[%s1103_s7 + $0x78] sm:$0xff]  ;;  %567 = vmatpush.bf16.msra.mxu0 %v925_v5  ;;  %v932_v10 = vld [vmem:[%s1103_s7 + $0x70] sm:$0xff]  ;;  %v931_v14 = vld [vmem:[%s1103_s7 + $0x68] sm:$0xff] }
  0x27   : > { %v941_v7 = vld [vmem:[%s1103_s7 + $0xb8] sm:$0xff]  ;;  %581 = vmatpush.bf16.msra.mxu1 %v933_v6  ;;  %v940_v11 = vld [vmem:[%s1103_s7 + $0xb0] sm:$0xff]  ;;  %v939_v15 = vld [vmem:[%s1103_s7 + $0xa8] sm:$0xff] }
  0x28   : > { %v949_v8 = vld [vmem:[%s1103_s7 + $0xf8] sm:$0xff]  ;;  %595 = vmatpush.bf16.msra.mxu2 %v941_v7  ;;  %v948_v12 = vld [vmem:[%s1103_s7 + $0xf0] sm:$0xff]  ;;  %v947_v16 = vld [vmem:[%s1103_s7 + $0xe8] sm:$0xff] }
  0x29   : > { %609 = vmatpush.bf16.msra.mxu3 %v949_v8  ;;  %v922_v17 = vld [vmem:[%s1103_s7 + $0x20] sm:$0xff]  ;;  %v921_v21 = vld [vmem:[%s1103_s7 + $0x18] sm:$0xff]  ;;  %v920_v25 = vld [vmem:[%s1103_s7 + $0x10] sm:$0xff] }
  0x2a   : > { %568 = vmatpush.bf16.msra.mxu0 %v924_v9  ;;  %v930_v18 = vld [vmem:[%s1103_s7 + $0x60] sm:$0xff]  ;;  %v929_v22 = vld [vmem:[%s1103_s7 + $0x58] sm:$0xff]  ;;  %v928_v26 = vld [vmem:[%s1103_s7 + $0x50] sm:$0xff] }
  0x2b   : > { %582 = vmatpush.bf16.msra.mxu1 %v932_v10  ;;  %v938_v19 = vld [vmem:[%s1103_s7 + $0xa0] sm:$0xff]  ;;  %v937_v23 = vld [vmem:[%s1103_s7 + $0x98] sm:$0xff]  ;;  %v936_v27 = vld [vmem:[%s1103_s7 + $0x90] sm:$0xff] }
  0x2c   : > { %596 = vmatpush.bf16.msra.mxu2 %v940_v11  ;;  %v946_v20 = vld [vmem:[%s1103_s7 + $0xe0] sm:$0xff]  ;;  %v945_v24 = vld [vmem:[%s1103_s7 + $0xd8] sm:$0xff]  ;;  %v944_v28 = vld [vmem:[%s1103_s7 + $0xd0] sm:$0xff] }
  0x2d   : > { %610 = vmatpush.bf16.msra.mxu3 %v948_v12  ;;  %v919_v29 = vld [vmem:[%s1103_s7 + $0x8] sm:$0xff]  ;;  %v918_v33 = vld [vmem:[%s1103_s7] sm:$0xff]  ;;  %v766_v37 = vld [vmem:[%s1105_s8] sm:$0xf] }
  0x2e   : > { %569 = vmatpush.bf16.msra.mxu0 %v923_v13  ;;  %v927_v30 = vld [vmem:[%s1103_s7 + $0x48] sm:$0xff]  ;;  %v926_v34 = vld [vmem:[%s1103_s7 + $0x40] sm:$0xff]  ;;  %v914_v39 = vld [vmem:[%s1105_s8 + $0x4] sm:$0xf] }
  0x2f   : > { %583 = vmatpush.bf16.msra.mxu1 %v931_v14  ;;  %v935_v31 = vld [vmem:[%s1103_s7 + $0x88] sm:$0xff]  ;;  %v934_v35 = vld [vmem:[%s1103_s7 + $0x80] sm:$0xff]  ;;  %v774_v41 = vld [vmem:[%s1105_s8 + $0x8] sm:$0xf] }
  0x30   : > { %597 = vmatpush.bf16.msra.mxu2 %v939_v15  ;;  %v943_v32 = vld [vmem:[%s1103_s7 + $0xc8] sm:$0xff]  ;;  %v942_v36 = vld [vmem:[%s1103_s7 + $0xc0] sm:$0xff]  ;;  %v915_v43 = vld [vmem:[%s1105_s8 + $0xc] sm:$0xf] }
  0x31   : > { %611 = vmatpush.bf16.msra.mxu3 %v947_v16  ;;  %v916_v38 = vld [vmem:[%s1105_s8 + $0xc] sm:$0xf0]  ;;  %v768_v40 = vld [vmem:[%s1105_s8 + $0x10] sm:$0xf0]  ;;  %v917_v42 = vld [vmem:[%s1105_s8 + $0x14] sm:$0xf0] }
  0x32   : > { %570 = vmatpush.bf16.msra.mxu0 %v922_v17  ;;  %v776_v44 = vld [vmem:[%s1105_s8 + $0x18] sm:$0xf0]  ;;  %v767_v45 = vor.u32 %v916_v38, %v766_v37  ;;  %v771_v46 = vor.u32 %v914_v39, %v768_v40  ;;  %v775_v47 = vor.u32 %v917_v42, %v774_v41  ;;  %v285_v55 = vld [vmem:[#allocation2] sm:$0xff] }
  0x33   : > { %584 = vmatpush.bf16.msra.mxu1 %v930_v18  ;;  %v779_v48 = vor.u32 %v915_v43, %v776_v44  ;;  %v286_v63 = vld [vmem:[#allocation2 + $0x8] sm:$0xff] }
  0x34   : > { %598 = vmatpush.bf16.msra.mxu2 %v938_v19 }
  0x35   : > { %612 = vmatpush.bf16.msra.mxu3 %v946_v20 }
  0x36   : > { %571 = vmatpush.bf16.msra.mxu0 %v921_v21 }
  0x37   : > { %585 = vmatpush.bf16.msra.mxu1 %v929_v22 }
  0x38   : > { %599 = vmatpush.bf16.msra.mxu2 %v937_v23 }
  0x39   : > { %613 = vmatpush.bf16.msra.mxu3 %v945_v24 }
  0x3a   : > { %572 = vmatpush.bf16.msra.mxu0 %v920_v25 }
  0x3b   : > { %586 = vmatpush.bf16.msra.mxu1 %v928_v26 }
  0x3c   : > { %600 = vmatpush.bf16.msra.mxu2 %v936_v27 }
  0x3d   : > { %614 = vmatpush.bf16.msra.mxu3 %v944_v28 }
  0x3e   : > { %573 = vmatpush.bf16.msra.mxu0 %v919_v29 }
  0x3f   : > { %587 = vmatpush.bf16.msra.mxu1 %v927_v30 }
  0x40   : > { %601 = vmatpush.bf16.msra.mxu2 %v935_v31 }
  0x41   : > { %615 = vmatpush.bf16.msra.mxu3 %v943_v32 }
  0x42   : > { %574 = vmatpush.bf16.msra.mxu0 %v918_v33 }
  0x43   : > { %588 = vmatpush.bf16.msra.mxu1 %v926_v34 }
  0x44   : > { %602 = vmatpush.bf16.msra.mxu2 %v934_v35 }
  0x45   : > { %616 = vmatpush.bf16.msra.mxu3 %v942_v36  ;;  %575 = vmatmul.bf16.vlgmr.msra.gmra.mxu0 %v767_v45 }
  0x46   : > { %589 = vmatmul.bf16.vlgmr.msra.gmra.mxu1 %v771_v46 }
  0x47   : > { %603 = vmatmul.bf16.vlgmr.msra.gmra.mxu2 %v775_v47 }
  0x48   : > { %617 = vmatmul.bf16.vlgmr.msra.gmra.mxu3 %v779_v48 }
  0xc2   : > { %v576_v49 = vpop.f32.mrf.mxu0 }
  0xc3   : > { %v590_v50 = vpop.f32.mrf.mxu1 }
  0xc4   : > { %v591_v51 = vadd.f32 %v590_v50, %v576_v49 }
  0xca   : > { %v604_v52 = vpop.f32.mrf.mxu2  ;;  %v578_v57 = vpop.f32.mrf.mxu0 }
  0xcb   : > { %v618_v53 = vpop.f32.mrf.mxu3  ;;  %v605_v54 = vadd.f32 %v604_v52, %v591_v51  ;;  %v592_v58 = vpop.f32.mrf.mxu1 }
  0xcc   : > { %v593_v60 = vadd.f32 %v592_v58, %v578_v57 }
  0xcd   : > { %v619_v56 = vadd.f32 %v618_v53, %v605_v54 }
  0xcf   : > { %v623_v59 = vadd.f32 %v619_v56, %v285_v55 }
  0xd1   : > { %625 = vst [vmem:[#allocation2] sm:$0xff] %v623_v59 }
  0xd2   : > { %v606_v61 = vpop.f32.mrf.mxu2 }
  0xd3   : > { %v607_v62 = vadd.f32 %v606_v61, %v593_v60  ;;  %v620_v0 = vpop.f32.mrf.mxu3 }
  0xd5   : > { %v621_v1 = vadd.f32 %v620_v0, %v607_v62  ;;  %630 = sbr.rel (%p908_p11) target bundleno = 228 (0xe4), region = 63 }
  0xd7   : > { %v624_v2 = vadd.f32 %v621_v1, %v286_v63 }
  0xd9   : > { %626 = vst [vmem:[#allocation2 + $0x8] sm:$0xff] %v624_v2 }
  0xda   : > { %v631_v3 = vld [vmem:[#allocation2] sm:$0xff] }
  0xdb   : > { %v991_v4 = vld [vmem:[%s1175_s2] ss:$0 sm:$0xff] }
  0xdc   : > { %v637_v6 = vadd.f32 %v991_v4, %v631_v3 }
  0xde   : > { %639 = vst [vmem:[%s1176_s3] sm:$0xff] %v637_v6 }
  0xe0   : > { %v632_v5 = vld [vmem:[#allocation2 + $0x8] sm:$0xff] }
  0xe1   : > { %v638_v7 = vadd.f32 %v991_v4, %v632_v5 }
  0xe3   : > { %640 = vst [vmem:[%s1176_s3 + $0x8] sm:$0xff] %v638_v7 }
  0xe4 PF: > { %s13_s16 = sadd.s32 1, %s1030_s16   ;;  %s1177_s12 = smov %s1018_s13 }
  0xe5   : > { %p10_p12 = scmp.ge.s32.totalorder %s13_s16, 4   ;;  %s1178_s13 = smov %s1088_s20 }
  0xe6   : > { %s1179_s14 = smov %s1026_s15  ;;  %s1180_s15 = smov %s1182_s17 }
  0xe7   :  { %12 = sbr.rel (!%p10_p12) target bundleno = 3 (0x3), region = 104 }

</bundles_post_ra>
